<compile_context>
chip_gen: v7x
topology: tpu7x:2x2x1
jax: 0.10.0
libtpu: 0.0.40
codegen_flags: <defaults>
</compile_context>

<pallas_src>
import jax
import jax.numpy as jnp
from jax.experimental import pallas as pl
from jax.experimental.pallas import tpu as pltpu


def _round_up(x, m):
    return ((x + m - 1) // m) * m


def _ffn_kernel(x_ref, w1_ref, b1_ref, w2_ref, b2_ref, o_ref, acc_ref):
    # Grid: (i over M tiles [parallel], h over H slabs [arbitrary, last]).
    # x_ref:  (tm, E)    w1_ref: (E, th)   b1_ref: (1, th)
    # w2_ref: (th, E)    b2_ref: (1, E)    o_ref:  (tm, E)   acc_ref: (tm, E) f32
    h_idx = pl.program_id(1)

    @pl.when(h_idx == 0)
    def _init():
        # Fold the second bias into the accumulator init (added exactly once).
        acc_ref[...] = jnp.broadcast_to(
            b2_ref[...].astype(jnp.float32), acc_ref.shape)

    x = x_ref[...]
    # First matmul for this hidden slab, bias + ReLU fused.
    hid = jnp.dot(x, w1_ref[...], preferred_element_type=jnp.float32)
    hid = jnp.maximum(hid + b1_ref[...].astype(jnp.float32), 0.0)
    # Second matmul: accumulate this slab's partial contribution.
    acc_ref[...] += jnp.dot(hid.astype(w2_ref.dtype), w2_ref[...],
                            preferred_element_type=jnp.float32)

    @pl.when(h_idx == pl.num_programs(1) - 1)
    def _finalize():
        o_ref[...] = acc_ref[...].astype(o_ref.dtype)


def feed_forward(x, w1, b1, w2, b2, *, tm=None, th=None):
    """Fused FFN: x (B, S, E) -> (B, S, E).

    w1: (E, H), b1: (H,), w2: (H, E), b2: (E,)  (i.e. PyTorch weights
    transposed so the kernel does plain x @ W + b).
    """
    B, S, E = x.shape
    Ew, H = w1.shape
    assert Ew == E and w2.shape == (H, E) and b1.shape == (H,) and b2.shape == (E,)
    M = B * S

    # ---- tile selection ----------------------------------------------------
    # M tile: as large as reasonable (feeds full MXU rows), >= 8 sublanes,
    # works for bf16 too (>= 16 when tm >= 16).
    if tm is None:
        tm = 256 if M >= 256 else _round_up(M, 8)
    tm = max(8, _round_up(int(tm), 8))
    M_pad = _round_up(M, tm)

    # H slab: largest 128-multiple slab (<= 2048) that divides H, else whole H.
    if th is None:
        th = H
        for cand in (2048, 1024, 512, 256, 128):
            if H % cand == 0:
                th = cand
                break
    th = int(th)
    assert H % th == 0, "hidden dim must be divisible by the H slab"

    # ---- flatten + pad M ---------------------------------------------------
    x2 = x.reshape(M, E)
    if M_pad != M:
        x2 = jnp.pad(x2, ((0, M_pad - M), (0, 0)))
    b1_2 = b1.reshape(1, H)
    b2_2 = b2.reshape(1, E)

    grid = (M_pad // tm, H // th)

    # ---- VMEM budget (double-buffered in/out tiles + f32 accumulator) ------
    xbe = x2.dtype.itemsize
    wbe = w1.dtype.itemsize
    vmem_bytes = (
        2 * tm * E * xbe          # x tile
        + 2 * E * th * wbe        # W1 slab
        + 2 * th * wbe            # b1 slab
        + 2 * th * E * wbe        # W2 slab
        + 2 * E * wbe             # b2
        + 2 * tm * E * xbe        # out tile
        + tm * E * 4              # f32 accumulator
    )
    vmem_limit = int(min(max(2 * vmem_bytes, 32 << 20), 64 << 20))

    # ---- cost estimate (advisory, helps XLA schedule neighbours) -----------
    cost = pl.CostEstimate(
        flops=4 * M_pad * E * H,          # two matmuls, 2*M*E*H each
        transcendentals=0,
        bytes_accessed=(x2.size * xbe + M_pad * E * xbe
                        + grid[0] * (w1.size + w2.size) * wbe
                        + b1.size * wbe + b2.size * wbe),
    )

    out = pl.pallas_call(
        _ffn_kernel,
        out_shape=jax.ShapeDtypeStruct((M_pad, E), x.dtype),
        grid_spec=pltpu.PrefetchScalarGridSpec(
            num_scalar_prefetch=0,
            grid=grid,
            in_specs=[
                pl.BlockSpec((tm, E), lambda i, h: (i, 0)),   # x tile
                pl.BlockSpec((E, th), lambda i, h: (0, h)),   # W1 slab
                pl.BlockSpec((1, th), lambda i, h: (0, h)),   # b1 slab
                pl.BlockSpec((th, E), lambda i, h: (h, 0)),   # W2 slab
                pl.BlockSpec((1, E), lambda i, h: (0, 0)),    # b2
            ],
            out_specs=pl.BlockSpec((tm, E), lambda i, h: (i, 0)),
            scratch_shapes=[pltpu.VMEM((tm, E), jnp.float32)],
        ),
        compiler_params=pltpu.CompilerParams(
            dimension_semantics=("parallel", "arbitrary"),
            vmem_limit_bytes=vmem_limit),
        cost_estimate=cost,
    )(x2, w1, b1_2, w2, b2_2)

    if M_pad != M:
        out = out[:M]
    return out.reshape(B, S, E)


def _reference(x, w1, b1, w2, b2):
    B, S, E = x.shape
    h = jnp.maximum(x.reshape(-1, E) @ w1 + b1, 0.0)
    return (h @ w2 + b2).reshape(B, S, E)


if __name__ == "__main__":
    # Small shapes consistent with the module: embed_dim=32, hidden=4*32=128.
    B, S, E = 2, 8, 32
    H = 4 * E

    key = jax.random.PRNGKey(0)
    kx, kw1, kb1, kw2, kb2 = jax.random.split(key, 5)

    x = jax.random.normal(kx, (B, S, E), dtype=jnp.float32)
    # Deterministic parameter init (roughly matching nn.Linear scale).
    w1 = jax.random.uniform(kw1, (E, H), minval=-1.0, maxval=1.0) / jnp.sqrt(E)
    b1 = jax.random.uniform(kb1, (H,), minval=-1.0, maxval=1.0) / jnp.sqrt(E)
    w2 = jax.random.uniform(kw2, (H, E), minval=-1.0, maxval=1.0) / jnp.sqrt(H)
    b2 = jax.random.uniform(kb2, (E,), minval=-1.0, maxval=1.0) / jnp.sqrt(H)
    w1, b1, w2, b2 = (a.astype(jnp.float32) for a in (w1, b1, w2, b2))

    # Case 1: tiny shape (single grid step).
    y = feed_forward(x, w1, b1, w2, b2)
    jax.block_until_ready(y)
    ref = _reference(x, w1, b1, w2, b2)
    assert jnp.allclose(y, ref, atol=1e-4, rtol=1e-4), "mismatch vs reference (small)"

    # Case 2: exercises the large M tile + ragged-M padding path (M=320 -> tm=256).
    x_big = jax.random.normal(jax.random.PRNGKey(1), (4, 80, E), dtype=jnp.float32)
    y_big = feed_forward(x_big, w1, b1, w2, b2)
    jax.block_until_ready(y_big)
    ref_big = _reference(x_big, w1, b1, w2, b2)
    assert jnp.allclose(y_big, ref_big, atol=1e-4, rtol=1e-4), "mismatch vs reference (tiled)"

    print("KERNEL_OK")
</pallas_src>

<mosaic_0001>
module attributes {stable_mosaic.version = 11 : i64} {
  func.func @_ffn_kernel(%arg0: i32, %arg1: i32, %arg2: memref<16x32xf32, #tpu.memory_space<vmem>>, %arg3: memref<32x128xf32, #tpu.memory_space<vmem>>, %arg4: memref<1x128xf32, #tpu.memory_space<vmem>>, %arg5: memref<128x32xf32, #tpu.memory_space<vmem>>, %arg6: memref<1x32xf32, #tpu.memory_space<vmem>>, %arg7: memref<16x32xf32, #tpu.memory_space<vmem>>, %arg8: memref<16x32xf32, #tpu.memory_space<vmem>>) attributes {dimension_semantics = [#tpu.dimension_semantics<parallel>, #tpu.dimension_semantics<arbitrary>], iteration_bounds = array<i64: 1, 1>, scalar_prefetch = 0 : i64, scratch_operands = 1 : i64, tpu.core_type = #tpu.core_type<tc>, window_params = [{transform_indices = @transform_0, window_bounds = array<i64: 16, 32>}, {transform_indices = @transform_1, window_bounds = array<i64: 32, 128>}, {transform_indices = @transform_2, window_bounds = array<i64: 1, 128>}, {transform_indices = @transform_3, window_bounds = array<i64: 128, 32>}, {pipeline_mode = #tpu.pipeline_mode<synchronous>, transform_indices = @transform_4, window_bounds = array<i64: 1, 32>}, {transform_indices = @transform_5, window_bounds = array<i64: 16, 32>}]} {
    %c0_i32 = arith.constant 0 : i32
    %0 = arith.cmpi eq, %arg1, %c0_i32 : i32
    %1 = arith.extui %0 : i1 to i32
    %c0_i32_0 = arith.constant 0 : i32
    %2 = arith.cmpi ne, %1, %c0_i32_0 : i32
    scf.if %2 {
      %c0_16 = arith.constant 0 : index
      %c0_17 = arith.constant 0 : index
      %19 = vector.load %arg6[%c0_16, %c0_17] : memref<1x32xf32, #tpu.memory_space<vmem>>, vector<1x32xf32>
      %20 = vector.shape_cast %19 : vector<1x32xf32> to vector<1x32xf32>
      %21 = vector.broadcast %20 : vector<1x32xf32> to vector<16x32xf32>
      %c0_18 = arith.constant 0 : index
      %c0_19 = arith.constant 0 : index
      %22 = vector.load %arg8[%c0_18, %c0_19] : memref<16x32xf32, #tpu.memory_space<vmem>>, vector<16x32xf32>
      tpu.vector_store %arg8[%c0_18, %c0_19], %21 {strides = array<i32>} : memref<16x32xf32, #tpu.memory_space<vmem>>, vector<16x32xf32>,
    } else {
    }
    %c0 = arith.constant 0 : index
    %c0_1 = arith.constant 0 : index
    %3 = vector.load %arg2[%c0, %c0_1] : memref<16x32xf32, #tpu.memory_space<vmem>>, vector<16x32xf32>
    %c0_2 = arith.constant 0 : index
    %c0_3 = arith.constant 0 : index
    %4 = vector.load %arg3[%c0_2, %c0_3] : memref<32x128xf32, #tpu.memory_space<vmem>>, vector<32x128xf32>
    %cst = arith.constant dense<0.000000e+00> : vector<16x128xf32>
    %5 = tpu.matmul %3, %4, %cst {dimension_numbers = #tpu.dot_dimension_numbers<[1], [0], [0], [1], [0, 0, 1, 1], [], []>} : vector<16x32xf32>, vector<32x128xf32>, vector<16x128xf32> -> vector<16x128xf32>
    %c0_4 = arith.constant 0 : index
    %c0_5 = arith.constant 0 : index
    %6 = vector.load %arg4[%c0_4, %c0_5] : memref<1x128xf32, #tpu.memory_space<vmem>>, vector<1x128xf32>
    %7 = vector.broadcast %6 : vector<1x128xf32> to vector<16x128xf32>
    %8 = arith.addf %5, %7 : vector<16x128xf32>
    %cst_6 = arith.constant 0.000000e+00 : f32
    %9 = vector.broadcast %cst_6 : f32 to vector<16x128xf32>
    %10 = arith.maximumf %8, %9 : vector<16x128xf32>
    %c0_7 = arith.constant 0 : index
    %c0_8 = arith.constant 0 : index
    %11 = vector.load %arg8[%c0_7, %c0_8] : memref<16x32xf32, #tpu.memory_space<vmem>>, vector<16x32xf32>
    %c0_9 = arith.constant 0 : index
    %c0_10 = arith.constant 0 : index
    %12 = vector.load %arg5[%c0_9, %c0_10] : memref<128x32xf32, #tpu.memory_space<vmem>>, vector<128x32xf32>
    %cst_11 = arith.constant dense<0.000000e+00> : vector<16x32xf32>
    %13 = tpu.matmul %10, %12, %cst_11 {dimension_numbers = #tpu.dot_dimension_numbers<[1], [0], [0], [1], [0, 0, 1, 1], [], []>} : vector<16x128xf32>, vector<128x32xf32>, vector<16x32xf32> -> vector<16x32xf32>
    %14 = arith.addf %11, %13 : vector<16x32xf32>
    %c0_12 = arith.constant 0 : index
    %c0_13 = arith.constant 0 : index
    %15 = vector.load %arg8[%c0_12, %c0_13] : memref<16x32xf32, #tpu.memory_space<vmem>>, vector<16x32xf32>
    tpu.vector_store %arg8[%c0_12, %c0_13], %14 {strides = array<i32>} : memref<16x32xf32, #tpu.memory_space<vmem>>, vector<16x32xf32>,
    %c0_i32_14 = arith.constant 0 : i32
    %16 = arith.cmpi eq, %arg1, %c0_i32_14 : i32
    %17 = arith.extui %16 : i1 to i32
    %c0_i32_15 = arith.constant 0 : i32
    %18 = arith.cmpi ne, %17, %c0_i32_15 : i32
    scf.if %18 {
      %c0_16 = arith.constant 0 : index
      %c0_17 = arith.constant 0 : index
      %19 = vector.load %arg8[%c0_16, %c0_17] : memref<16x32xf32, #tpu.memory_space<vmem>>, vector<16x32xf32>
      %c0_18 = arith.constant 0 : index
      %c0_19 = arith.constant 0 : index
      %20 = vector.load %arg7[%c0_18, %c0_19] : memref<16x32xf32, #tpu.memory_space<vmem>>, vector<16x32xf32>
      tpu.vector_store %arg7[%c0_18, %c0_19], %19 {strides = array<i32>} : memref<16x32xf32, #tpu.memory_space<vmem>>, vector<16x32xf32>,
    } else {
    }
    return
  }
  func.func @transform_0(%arg0: i32, %arg1: i32) -> (i32, i32) {
    %c0_i32 = arith.constant 0 : i32
    %c0_i32_0 = arith.constant 0 : i32
    return %arg0, %c0_i32 : i32, i32
  }
  func.func @transform_1(%arg0: i32, %arg1: i32) -> (i32, i32) {
    %c0_i32 = arith.constant 0 : i32
    %c0_i32_0 = arith.constant 0 : i32
    return %c0_i32, %arg1 : i32, i32
  }
  func.func @transform_2(%arg0: i32, %arg1: i32) -> (i32, i32) {
    %c0_i32 = arith.constant 0 : i32
    %c0_i32_0 = arith.constant 0 : i32
    return %c0_i32, %arg1 : i32, i32
  }
  func.func @transform_3(%arg0: i32, %arg1: i32) -> (i32, i32) {
    %c0_i32 = arith.constant 0 : i32
    %c0_i32_0 = arith.constant 0 : i32
    return %arg1, %c0_i32 : i32, i32
  }
  func.func @transform_4(%arg0: i32, %arg1: i32) -> (i32, i32) {
    %c0_i32 = arith.constant 0 : i32
    %c0_i32_0 = arith.constant 0 : i32
    %c0_i32_1 = arith.constant 0 : i32
    return %c0_i32, %c0_i32_0 : i32, i32
  }
  func.func @transform_5(%arg0: i32, %arg1: i32) -> (i32, i32) {
    %c0_i32 = arith.constant 0 : i32
    %c0_i32_0 = arith.constant 0 : i32
    return %arg0, %c0_i32 : i32, i32
  }
}

</mosaic_0001>

<bundles_post_ra>
// kernel: tpu_custom_call.1
= control target key start
LH: loop header
LB: loop body
LE: loop exit
PB: predicated region body
PF: predicated region fallthrough
CT: control target
= control target key end

     0   :  { %vm32_vm0 = vcmask 261120   ;;  %s518_s0 = inlined_call_operand.vmem [shape: f32[16,32], index: 0, kind: input, shape index: {}]   ;;  %s519_s1 = inlined_call_operand.vmem [shape: f32[32,128], index: 1, kind: input, shape index: {}]   ;;  %s520_s2 = inlined_call_operand.vmem [shape: f32[1,128], index: 2, kind: input, shape index: {}]   ;;  %s521_s3 = inlined_call_operand.vmem [shape: f32[128,32], index: 3, kind: input, shape index: {}]   ;;  %s522_s4 = inlined_call_operand.vmem [shape: f32[1,32], index: 4, kind: input, shape index: {}]   ;;  %s523_s5 = inlined_call_operand.hbm [shape: f32[16,32], index: 5, kind: output, shape index: {}]  }
   0x1   :  { %v37_v0 = vld [vmem:[%s519_s1] sm:$0xff]  ;;  %v38_v1 = vld [vmem:[%s519_s1 + $0x8] sm:$0xff]  ;;  %v39_v2 = vld [vmem:[%s519_s1 + $0x10] sm:$0xff] }
   0x2   :  { %v326_v3 = vpack.c.bf16 %v38_v1, %v37_v0  ;;  %v40_v4 = vld [vmem:[%s519_s1 + $0x18] sm:$0xff]  ;;  %v35_v5 = vld [vmem:[%s518_s0] sm:$0xff]  ;;  %v135_v8 = vld [vmem:[%s521_s3 + $0x8] sm:$0xff] }
   0x3   :  { %v330_v6 = vpack.c.bf16 %v40_v4, %v39_v2  ;;  %288 = vmatprep.mubr.msk.f32.mxu0 %vm32_vm0, %v35_v5  ;;  %v134_v7 = vld [vmem:[%s521_s3] sm:$0xff]  ;;  %v136_v9 = vld [vmem:[%s521_s3 + $0x10] sm:$0xff]  ;;  %v137_v11 = vld [vmem:[%s521_s3 + $0x18] sm:$0xff] }
   0x4   :  { %327 = vmatprep.subr.bf16.mxu0 %v326_v3  ;;  %v334_v10 = vpack.c.bf16 %v135_v8, %v134_v7  ;;  %v338_v12 = vpack.c.bf16 %v137_v11, %v136_v9  ;;  %v138_v13 = vld [vmem:[%s521_s3 + $0x20] sm:$0xff]  ;;  %v139_v14 = vld [vmem:[%s521_s3 + $0x28] sm:$0xff] }
   0x5   :  { %329 = vmatpush3.bf16.msra.mxu0 %v326_v3 }
   0x6   :  { %331 = vmatprep.subr.bf16.mxu0 %v330_v6  ;;  %335 = vmatprep.subr.bf16.mxu1 %v334_v10 }
   0x7   :  { %337 = vmatpush3.bf16.msra.mxu1 %v334_v10 }
   0x8   :  { %10 = vsyncpa [#allocation4], 0  ;;  %339 = vmatprep.subr.bf16.mxu1 %v338_v12  ;;  %v342_v15 = vpack.c.bf16 %v139_v14, %v138_v13  ;;  %v36_v16 = vld [vmem:[%s518_s0 + $0x8] sm:$0xff]  ;;  %v140_v17 = vld [vmem:[%s521_s3 + $0x30] sm:$0xff] }
   0x9   :  { %333 = vmatpush3.bf16.msra.mxu0 %v330_v6  ;;  %v141_v18 = vld [vmem:[%s521_s3 + $0x38] sm:$0xff]  ;;  %v142_v20 = vld [vmem:[%s521_s3 + $0x40] sm:$0xff]  ;;  %v143_v21 = vld [vmem:[%s521_s3 + $0x48] sm:$0xff] }
   0xa   :  { %v346_v19 = vpack.c.bf16 %v141_v18, %v140_v17  ;;  %v350_v22 = vpack.c.bf16 %v143_v21, %v142_v20  ;;  %v144_v23 = vld [vmem:[%s521_s3 + $0x50] sm:$0xff]  ;;  %v145_v24 = vld [vmem:[%s521_s3 + $0x58] sm:$0xff]  ;;  %v146_v26 = vld [vmem:[%s521_s3 + $0x60] sm:$0xff] }
   0xb   :  { %341 = vmatpush3.bf16.msra.mxu1 %v338_v12  ;;  %v354_v25 = vpack.c.bf16 %v145_v24, %v144_v23  ;;  %v147_v27 = vld [vmem:[%s521_s3 + $0x68] sm:$0xff]  ;;  %v148_v29 = vld [vmem:[%s521_s3 + $0x70] sm:$0xff]  ;;  %v149_v30 = vld [vmem:[%s521_s3 + $0x78] sm:$0xff]  ;;  %s393_s3 = smov [#allocation3]  }
   0xc   :  { %289 = vmatmul.mubr.msk.f32.vlgmr.msra.gmra.mrb[0].mxu0 %vm32_vm0, %v36_v16  ;;  %343 = vmatprep.subr.bf16.mxu1 %v342_v15  ;;  %v358_v28 = vpack.c.bf16 %v147_v27, %v146_v26  ;;  %v362_v31 = vpack.c.bf16 %v149_v30, %v148_v29  ;;  %v252_v32 = vld [vmem:[%s522_s4] ss:$0 sm:$0xff] }
   0xd   :  { %34 = vst.msk [vmem:[#allocation2 + $0x8] sm:$0xff] %vm32_vm0, %v252_v32  ;;  %33 = vst.msk [vmem:[#allocation2] sm:$0xff] %vm32_vm0, %v252_v32  ;;  %v253_v33 = vld [vmem:[%s520_s2] ss:$0 sm:$0xff]  ;;  %s241_s2 = sshll.u32 %s393_s3, 4  ;;  %s242_s2 = int_to_ptr.vmem [resolvable:$true] %s241_s2 }
   0xe   :  { %s369_s4 = scalar_lea.vmem %s242_s2, 256  ;;  %p374_p1 = scmp.lt.s32.totalorder %s242_s2, %s242_s2 }
   0xf   :  { %345 = vmatpush3.bf16.msra.mxu1 %v342_v15  ;;  %p370_p0 = scmp.ne.s32.totalorder %s242_s2, %s369_s4  ;;  %p375_p2 = scmp.lt.s32.totalorder %s369_s4, %s369_s4 }
  0x10   :  { %347 = vmatprep.subr.bf16.mxu1 %v346_v19 }
  0x11   :  { %p376_p3 = por %p375_p2, %p374_p1 }
  0x13   :  { %349 = vmatpush3.bf16.msra.mxu1 %v346_v19  ;;  %p377_p4 = pnand %p376_p3, %p370_p0 }
  0x14   :  { %351 = vmatprep.subr.bf16.mxu1 %v350_v22  ;;  %v133_v40 = vld [vmem:[#allocation2 + $0x8] sm:$0xff]  ;;  %v132_v41 = vld [vmem:[#allocation2] sm:$0xff] }
  0x17   :  { %353 = vmatpush3.bf16.msra.mxu1 %v350_v22 }
  0x18   :  { %355 = vmatprep.subr.bf16.mxu1 %v354_v25 }
  0x1b   :  { %357 = vmatpush3.bf16.msra.mxu1 %v354_v25 }
  0x1c   :  { %359 = vmatprep.subr.bf16.mxu1 %v358_v28 }
  0x1f   :  { %361 = vmatpush3.bf16.msra.mxu1 %v358_v28 }
  0x20   :  { %363 = vmatprep.subr.bf16.mxu1 %v362_v31 }
  0x23   :  { %365 = vmatpush3.bf16.msra.mxu1 %v362_v31 }
  0xdf   :  { %v290_v34 = vpop.f32.mrb[0].mxu0 }
  0xe0   :  { %v127_v35 = vadd.f32 %v290_v34, %v253_v33  ;;  %v121_v36 = vpop.f32.mrb[1].mxu0 }
  0xe1   :  { %v122_v37 = vadd.f32 %v253_v33, %v121_v36 }
  0xe2   :  { %v131_v39 = vmax.f32 %v127_v35, 0.0 }
  0xe3   :  { %v130_v38 = vmax.f32 %v122_v37, 0.0 }
  0xe5   :  { %323 = vmatprep.mubr.f32.mxu1 %v130_v38 }
  0xe6   :  { %324 = vmatmul.mubr.f32.vlgmr.msra.gmra.mrb[0].mxu1 %v131_v39 }
 0x1b9   :  { %v325_v42 = vpop.f32.mrb[0].mxu1 }
 0x1ba   :  { %v226_v43 = vadd.f32 %v325_v42, %v133_v40  ;;  %v216_v44 = vpop.f32.mrb[1].mxu1 }
 0x1bb   :  { %v225_v45 = vadd.f32 %v216_v44, %v132_v41 }
 0x1bc   :  { %228 = vst.msk [vmem:[#allocation2 + $0x8] sm:$0xff] %vm32_vm0, %v226_v43 }
 0x1bd   :  { %227 = vst.msk [vmem:[#allocation2] sm:$0xff] %vm32_vm0, %v225_v45 }
 0x1c3   :  { %v233_v46 = vld [vmem:[#allocation2 + $0x8] sm:$0xff] }
 0x1c4   :  { %v232_v47 = vld [vmem:[#allocation2] sm:$0xff]  ;;  %235 = vst.msk [vmem:[#allocation3 + $0x8] sm:$0xff] %vm32_vm0, %v233_v46 }
 0x1c5   :  { %234 = vst.msk [vmem:[#allocation3] sm:$0xff] %vm32_vm0, %v232_v47 }
 0x1c6   :  { %380 = shalt.err (!%p377_p4)
}
 0x1c7   :  { %s381_s15 = scalar_lea.hbm %s523_s5, 256 }
 0x1c8   :  { %p382_p5 = scmp.ne.s32.totalorder %s523_s5, %s381_s15  ;;  %p385_p6 = scmp.lt.u32.totalorder %s381_s15, %s523_s5 }
 0x1ca   :  { %p387_p7 = pnand %p385_p6, %p382_p5 }
 0x1cc   :  { %390 = shalt.err (!%p387_p7)
}
 0x1cd   :  { %s394_s20 = smov 128   ;;  %s395_s21 = smov 8  }
 0x1ce   :  { %247 = dma.vmem_to_hbm [thread:$0]  %s242_s2, 256, %s523_s5, [#allocation4], %s394_s20, %s394_s20, %s395_s21  }
 0x1cf   :  { %391 = dma.done.wait [#allocation4], 256  }
 0x1d0   :  { %392 = vsyncadd [#allocation4], 4294967040 }
 0x1d1   :  { %251 = vsyncpa [#allocation4], 1 }

</bundles_post_ra>
